<compile_context>
chip_gen: v6e
topology: v6e:2x2x1
jax: 0.10.0
libtpu: 0.0.40
codegen_flags: <defaults>
</compile_context>

<pallas_src>
import functools
import math

import jax
import jax.numpy as jnp
from jax.experimental import pallas as pl
from jax.experimental.pallas import tpu as pltpu


def _sdp_kernel(q_ref, k_ref, o_ref, *, scale):
    # q_ref: (tq, D), k_ref: (tk, D)  ->  o_ref: (tq, tk) = (Q @ K^T) * scale
    s = jax.lax.dot_general(
        q_ref[...],
        k_ref[...],
        dimension_numbers=(((1,), (1,)), ((), ())),  # contract over D
        preferred_element_type=jnp.float32,          # f32 MXU accumulation
    )
    o_ref[...] = (s * scale).astype(o_ref.dtype)


def _pick_tile(n: int, preferred: int, granule: int) -> int:
    """Largest tile <= preferred that divides n and is a multiple of granule.

    Falls back to the full extent (the "block == full array dim" escape hatch
    of the (8, 128) rule) when no such tile exists or n is already small.
    """
    if n <= preferred or n % granule != 0:
        return n
    t = (preferred // granule) * granule
    while t >= granule:
        if n % t == 0:
            return t
        t -= granule
    return n


def scaled_dot_product(queries: jax.Array, keys: jax.Array,
                       *, tq: int = 256, tk: int = 512) -> jax.Array:
    """Equivalent of ScaledDotProduct().forward(queries, keys).

    queries: (B, Lq, D), keys: (B, Lk, D)  ->  (B, Lq, Lk)
    """
    B, Lq, D = queries.shape
    Bk, Lk, Dk = keys.shape
    assert B == Bk and D == Dk, "batch / feature dims of queries and keys must match"

    scale = 1.0 / math.sqrt(D)

    # tq: sublane dim of the Q tile and of the output -> granule 8.
    # tk: sublane dim of the K tile AND lane dim of the output -> granule 128
    #     (keeps output stores unmasked / lane-dense).
    tq = _pick_tile(Lq, tq, 8)
    tk = _pick_tile(Lk, tk, 128)

    grid = (B, Lq // tq, Lk // tk)

    kernel = functools.partial(_sdp_kernel, scale=scale)

    return pl.pallas_call(
        kernel,
        out_shape=jax.ShapeDtypeStruct((B, Lq, Lk), queries.dtype),
        grid=grid,
        in_specs=[
            # Batch dim squeezed out of the kernel view (block size None along
            # batch); index_map returns block indices.  Q tile depends only on
            # (b, i) so it is NOT re-DMA'd while j (innermost) sweeps the keys.
            pl.BlockSpec((None, tq, D), lambda b, i, j: (b, i, 0)),
            pl.BlockSpec((None, tk, D), lambda b, i, j: (b, j, 0)),
        ],
        out_specs=pl.BlockSpec((None, tq, tk), lambda b, i, j: (b, i, j)),
        compiler_params=pltpu.CompilerParams(
            # D is contracted entirely inside the block -> no reduction grid
            # axis -> every axis is independent and TensorCore-shardable.
            dimension_semantics=("parallel", "parallel", "parallel"),
        ),
    )(queries, keys)


if __name__ == "__main__":
    key = jax.random.PRNGKey(0)
    kq, kk = jax.random.split(key)

    # Small shapes consistent with the module: batch=2, seq=8, hidden=32.
    B, L, D = 2, 8, 32
    queries = jax.random.normal(kq, (B, L, D), dtype=jnp.float32)
    keys = jax.random.normal(kk, (B, L, D), dtype=jnp.float32)

    out = scaled_dot_product(queries, keys)
    out = jax.block_until_ready(out)

    # Reference: torch.bmm(queries, keys.transpose(1, 2)) / sqrt(D)
    ref = jnp.einsum("bqd,bkd->bqk", queries, keys) / (D ** 0.5)

    assert out.shape == (B, L, L)
    assert out.dtype == queries.dtype
    assert jnp.allclose(out, ref, atol=1e-5, rtol=1e-5)

    print("KERNEL_OK")
</pallas_src>

<mosaic_0001>
module attributes {stable_mosaic.version = 11 : i64} {
  func.func @_sdp_kernel(%arg0: i32, %arg1: i32, %arg2: i32, %arg3: memref<1x8x32xf32, #tpu.memory_space<vmem>>, %arg4: memref<1x8x32xf32, #tpu.memory_space<vmem>>, %arg5: memref<1x8x8xf32, #tpu.memory_space<vmem>>) attributes {dimension_semantics = [#tpu.dimension_semantics<parallel>, #tpu.dimension_semantics<parallel>, #tpu.dimension_semantics<parallel>], iteration_bounds = array<i64: 2, 1, 1>, scalar_prefetch = 0 : i64, scratch_operands = 0 : i64, tpu.core_type = #tpu.core_type<tc>, window_params = [{transform_indices = @transform_0, window_bounds = array<i64: 1, 8, 32>}, {transform_indices = @transform_1, window_bounds = array<i64: 1, 8, 32>}, {transform_indices = @transform_2, window_bounds = array<i64: 1, 8, 8>}]} {
    %c0 = arith.constant 0 : index
    %c0_0 = arith.constant 0 : index
    %c0_1 = arith.constant 0 : index
    %0 = vector.load %arg3[%c0, %c0_0, %c0_1] : memref<1x8x32xf32, #tpu.memory_space<vmem>>, vector<1x8x32xf32>
    %1 = vector.shape_cast %0 : vector<1x8x32xf32> to vector<8x32xf32>
    %c0_2 = arith.constant 0 : index
    %c0_3 = arith.constant 0 : index
    %c0_4 = arith.constant 0 : index
    %2 = vector.load %arg4[%c0_2, %c0_3, %c0_4] : memref<1x8x32xf32, #tpu.memory_space<vmem>>, vector<1x8x32xf32>
    %3 = vector.shape_cast %2 : vector<1x8x32xf32> to vector<8x32xf32>
    %cst = arith.constant dense<0.000000e+00> : vector<8x8xf32>
    %4 = tpu.matmul %1, %3, %cst {dimension_numbers = #tpu.dot_dimension_numbers<[1], [1], [0], [0], [0, 0, 1, 0], [], []>} : vector<8x32xf32>, vector<8x32xf32>, vector<8x8xf32> -> vector<8x8xf32>
    %cst_5 = arith.constant 0.176776692 : f32
    %5 = vector.broadcast %cst_5 : f32 to vector<8x8xf32>
    %6 = arith.mulf %4, %5 : vector<8x8xf32>
    %c0_6 = arith.constant 0 : index
    %c0_7 = arith.constant 0 : index
    %c0_8 = arith.constant 0 : index
    %7 = vector.load %arg5[%c0_6, %c0_7, %c0_8] : memref<1x8x8xf32, #tpu.memory_space<vmem>>, vector<1x8x8xf32>
    %8 = vector.shape_cast %7 : vector<1x8x8xf32> to vector<8x8xf32>
    %9 = vector.shape_cast %6 : vector<8x8xf32> to vector<1x8x8xf32>
    tpu.vector_store %arg5[%c0_6, %c0_7, %c0_8], %9 {strides = array<i32>} : memref<1x8x8xf32, #tpu.memory_space<vmem>>, vector<1x8x8xf32>,
    return
  }
  func.func @transform_0(%arg0: i32, %arg1: i32, %arg2: i32) -> (i32, i32, i32) {
    %c0_i32 = arith.constant 0 : i32
    %c0_i32_0 = arith.constant 0 : i32
    return %arg0, %arg1, %c0_i32 : i32, i32, i32
  }
  func.func @transform_1(%arg0: i32, %arg1: i32, %arg2: i32) -> (i32, i32, i32) {
    %c0_i32 = arith.constant 0 : i32
    %c0_i32_0 = arith.constant 0 : i32
    return %arg0, %arg2, %c0_i32 : i32, i32, i32
  }
  func.func @transform_2(%arg0: i32, %arg1: i32, %arg2: i32) -> (i32, i32, i32) {
    %c0_i32 = arith.constant 0 : i32
    return %arg0, %arg1, %arg2 : i32, i32, i32
  }
}

</mosaic_0001>

<bundles_post_ra>
// kernel: tpu_custom_call.1
= control target key start
LH: loop header
LB: loop body
LE: loop exit
PB: predicated region body
PF: predicated region fallthrough
CT: control target
= control target key end

     0   :  { %7 = vsyncpa [#allocation3], 0  ;;  %s854_s0 = inlined_call_operand.hbm [shape: f32[2,8,32], index: 0, kind: input, shape index: {}]   ;;  %s855_s1 = inlined_call_operand.hbm [shape: f32[2,8,32], index: 1, kind: input, shape index: {}]   ;;  %s856_s2 = inlined_call_operand.hbm [shape: f32[2,8,8], index: 2, kind: output, shape index: {}]  }
   0x1   :  { %9 = vsyncpa [#allocation3 + $0x1], 0 }
   0x2   :  { %10 = vsyncpa [#allocation6], 0 }
   0x3   :  { %12 = vsyncpa [#allocation6 + $0x1], 0 }
   0x4   :  { %13 = vsyncpa [#allocation4], 0 }
   0x5   :  { %15 = vsyncpa [#allocation4 + $0x1], 0  ;;  %s687_s9 = smov 0   ;;  %s689_s10 = smov 0  }
   0x6   :  { %s691_s11 = smov 0   ;;  %s693_s12 = smov 0  }
   0x7   :  { %s695_s13 = smov 0   ;;  %s697_s14 = smov 0  }
   0x8 LB: > { %s431_s15 = sadd.s32 4294967295, %s665_s14   ;;  %s432_s16 = sadd.s32 4294967294, %s665_s14   ;;  %s665_s14 = sphi %s697_s14, %s21_s14   ;;  %s661_s13 = sphi %s695_s13, %s868_s13   ;;  %s657_s12 = sphi %s693_s12, %s867_s12   ;;  %s653_s11 = sphi %s691_s11, %s866_s11   ;;  %s649_s10 = sphi %s689_s10, %s865_s10   ;;  %s645_s9 = sphi %s687_s9, %s864_s9  }
   0x9   : > { %s40_s17 = sadd.s32 1, %s661_s13  ;;  %s49_s18 = sadd.s32 1, %s653_s11 }
   0xa   : > { %p42_p0 = scmp.ge.s32.totalorder %s40_s17, 2  ;;  %p56_p1 = scmp.ne.s32.totalorder %s653_s11, %s649_s10 }
   0xb   : > { %p57_p2 = scmp.eq.s32.totalorder %s665_s14, 0  ;;  %p62_p3 = scmp.ne.s32.totalorder %s649_s10, %s645_s9 }
   0xc   : > { %s870_s17 = smov (%p42_p0, %s40_s17), 0  ;;  %p63_p5 = scmp.eq.s32.totalorder %s431_s15, 0 }
   0xd   : > { %p728_p4 = por %p57_p2, %p56_p1  ;;  %s44_s20 = ssub.s32 %s661_s13, %s870_s17 }
   0xe   : > { %p118_p6 = scmp.eq.s32.totalorder %s431_s15, 1  ;;  %p47_p7 = scmp.eq.s32.totalorder %s44_s20, 0 }
   0xf   : > { %p734_p8 = por %p63_p5, %p62_p3  ;;  %p124_p10 = scmp.eq.s32.totalorder %s432_s16, 1 }
  0x10   : > { %p738_p9 = por %p118_p6, %p56_p1  ;;  %p473_p13 = scmp.lt.s32.totalorder %s665_s14, 2 }
  0x11   : > { %s743_s23 = scalar_select %p47_p7, %s653_s11, %s49_s18  }
  0x12   : > { %p745_p11 = por %p124_p10, %p62_p3  ;;  %s752_s25 = sand.u32 1, %s653_s11  }
  0x13   : > { %s435_s26 = sshll.u32 %s752_s25, 3  ;;  %s436_s27 = sshll.u32 %s661_s13, 7 }
  0x14   : > { %s154_s30 = scalar_lea.hbm %s854_s0, %s436_s27  ;;  %s148_s3 = scalar_lea.vmem [#allocation2], %s435_s26 }
  0x15   : > { %s156_s4 = sshll.u32 %s148_s3, 4  ;;  %p761_p0 = pnand %p473_p13, %p728_p4  ;;  %s157_s4 = int_to_ptr.vmem [resolvable:$true] %s156_s4 }
  0x16   : > { %p439_p1 = scmp.ge.s32.totalorder %s665_s14, 1  ;;  %p180_p2 = scmp.lt.s32.totalorder %s665_s14, 3 }
  0x17   : > { %s145_s6 = scalar_lea.sflag [#allocation3], %s752_s25  ;;  %p527_p3 = pneg %p761_p0 }
  0x18   : > { %s538_s7 = scalar_lea.vmem %s157_s4, 128  ;;  %s667_s8 = smov [#allocation2]  }
  0x19   : > { %p539_p5 = scmp.ne.s32.totalorder %s157_s4, %s538_s7  ;;  %s543_s15 = sshll.u32 %s667_s8, 4  ;;  %s544_s15 = int_to_ptr.vmem [resolvable:$false] %s543_s15 }
  0x1a   : > { %s545_s16 = scalar_lea.vmem %s544_s15, 256  ;;  %p546_p4 = scmp.lt.s32.totalorder %s157_s4, %s544_s15 }
  0x1b   : > { %p541_p6 = pnand %p539_p5, %p527_p3  ;;  %p547_p10 = scmp.lt.s32.totalorder %s545_s16, %s538_s7 }
  0x1d   : > { %p542_p7 = pneg %p541_p6  ;;  %p548_p13 = por %p547_p10, %p546_p4 }
  0x1f   : > { %p549_p12 = pnand %p548_p13, %p542_p7 }
  0x21   : > { %552 = shalt.err (!%p549_p12)
}
  0x22   : > { %465 = dma.hbm_to_vmem [thread:$0]  (!%p761_p0), %s154_s30, 128, %s157_s4, %s145_s6  }
  0x23   : > { %p779_p5 = pnand %p439_p1, %p180_p2  ;;  %s173_s28 = scalar_lea.hbm %s855_s1, %s436_s27 }
  0x24   : > { %s167_s29 = scalar_lea.vmem [#allocation5], %s435_s26  ;;  %s164_s7 = scalar_lea.sflag [#allocation6], %s752_s25 }
  0x25   : > { %s175_s3 = sshll.u32 %s167_s29, 4  ;;  %s668_s30 = smov [#allocation5]   ;;  %s176_s3 = int_to_ptr.vmem [resolvable:$true] %s175_s3 }
  0x26   : > { %s566_s8 = scalar_lea.vmem %s176_s3, 128  ;;  %s571_s4 = sshll.u32 %s668_s30, 4  ;;  %s572_s4 = int_to_ptr.vmem [resolvable:$false] %s571_s4 }
  0x27   : > { %p567_p12 = scmp.ne.s32.totalorder %s176_s3, %s566_s8  ;;  %s573_s6 = scalar_lea.vmem %s572_s4, 256 }
  0x28   : > { %p574_p1 = scmp.lt.s32.totalorder %s176_s3, %s572_s4  ;;  %p575_p2 = scmp.lt.s32.totalorder %s573_s6, %s566_s8 }
  0x29   : > { %p569_p6 = pnand %p567_p12, %p527_p3 }
  0x2a   : > { %p576_p4 = por %p575_p2, %p574_p1 }
  0x2b   : > { %p570_p7 = pneg %p569_p6 }
  0x2d   : > { %p577_p10 = pnand %p576_p4, %p570_p7 }
  0x2f   : > { %580 = shalt.err (!%p577_p10)
}
  0x30   : > { %468 = dma.hbm_to_vmem [thread:$0]  (!%p761_p0), %s173_s28, 128, %s176_s3, %s164_s7  }
  0x31   : > { %184 = sbr.rel (%p779_p5) target bundleno = 270 (0x10e), region = 28  ;;  %s795_s25 = sand.u32 (!%p779_p5), 1, %s649_s10  }
  0x32   : > { %s440_s26 = sshll.u32 (!%p779_p5), %s795_s25, 3  ;;  %s187_s27 = scalar_lea.sflag (!%p779_p5), [#allocation3], %s795_s25 }
  0x33   : > { %s190_s15 = scalar_lea.vmem (!%p779_p5), [#allocation2], %s440_s26 }
  0x36   : > { %632 = dma.done.wait (%p734_p8), %s187_s27, 128  }
  0x37   : > { %634 = vsyncadd (%p734_p8), %s187_s27, 4294967168  ;;  %s196_s5 = scalar_lea.sflag [#allocation6], %s795_s25  ;;  %s199_s16 = scalar_lea.vmem [#allocation5], %s440_s26 }
  0x38   : > { %636 = dma.done.wait (%p734_p8), %s196_s5, 128  }
  0x39   : > { %638 = vsyncadd (%p734_p8), %s196_s5, 4294967168  ;;  %v669_v0 = vmov 0.0   ;;  %vm670_vm0 = vmmov 0   ;;  %vm227_vm1 = vcmask 261120   ;;  %v226_v1 = vld [vmem:[%s199_s16] sm:$0xff]  ;;  %v225_v2 = vld [vmem:[%s190_s15] sm:$0xff] }
  0x3a   : > { %451 = vmatprep.subr.mxu0 %v669_v0  ;;  %453 = vmatprep.mubr.msk.f32.mxu0 %vm670_vm0, %v669_v0  ;;  %s446_s18 = sshll.u32 %s657_s12, 7  ;;  %s224_s19 = scalar_lea.vmem [#allocation7], %s440_s26  ;;  %vm305_vm2 = vcmask 64512  }
  0x3b   : > { %452 = vmatpush3.xpose.msk.msra.mxu0 %vm227_vm1, %v226_v1  ;;  %s323_s20 = sshll.u32 %s224_s19, 4  ;;  %s812_s29 = scalar_lea.hbm %s856_s2, %s446_s18  ;;  %s324_s20 = int_to_ptr.vmem [resolvable:$true] %s323_s20 }
  0x3c   : > { %s308_s3 = scalar_lea.sflag [#allocation4], %s795_s25  ;;  %s581_s7 = scalar_lea.vmem %s324_s20, 128 }
  0x3d   : > { %p582_p8 = scmp.ne.s32.totalorder %s324_s20, %s581_s7  ;;  %s671_s12 = smov [#allocation7]  }
  0x3e   : > { %454 = vmatmul.mubr.msk.f32.vlgmr.msra.gmra.mxu0 %vm227_vm1, %v225_v2  ;;  %s585_s8 = sshll.u32 %s671_s12, 4  ;;  %s586_s8 = int_to_ptr.vmem [resolvable:$false] %s585_s8 }
  0x3f   : > { %p583_p0 = pnand %p582_p8, %p738_p9  ;;  %s587_s30 = scalar_lea.vmem %s586_s8, 256 }
  0x40   : > { %p588_p13 = scmp.lt.s32.totalorder %s324_s20, %s586_s8  ;;  %p589_p5 = scmp.lt.s32.totalorder %s587_s30, %s581_s7 }
  0x41   : > { %p584_p3 = pneg %p583_p0 }
  0x42   : > { %p590_p12 = por %p589_p5, %p588_p13 }
  0x44   : > { %p591_p6 = pnand %p590_p12, %p584_p3 }
  0xfe   : > { %v300_v3 = vpop.f32.mrf.mxu0 }
  0xff   : > { %v304_v4 = vmul.f32 0.17677669, %v300_v3 }
 0x100   : > { %v455_v5 = vpop.f32.mrf.mxu0 }
 0x101   : > { %306 = vst.msk [vmem:[%s224_s19] sm:$0xff] %vm305_vm2, %v304_v4 }
 0x102   : > { %594 = shalt.err (!%p591_p6)
}
 0x103   : > { %s595_s4 = scalar_lea.hbm %s812_s29, 128  ;;  %s599_s26 = scalar_lea.hbm %s856_s2, 256 }
 0x104   : > { %p596_p7 = scmp.ne.s32.totalorder %s812_s29, %s595_s4  ;;  %p600_p4 = scmp.lt.s32.totalorder %s812_s29, %s856_s2 }
 0x105   : > { %p601_p10 = scmp.lt.s32.totalorder %s599_s26, %s595_s4 }
 0x106   : > { %p597_p1 = pnand %p596_p7, %p738_p9 }
 0x107   : > { %p602_p8 = por %p601_p10, %p600_p4 }
 0x108   : > { %p598_p2 = pneg %p597_p1 }
 0x10a   : > { %p603_p0 = pnand %p602_p8, %p598_p2 }
 0x10c   : > { %606 = shalt.err (!%p603_p0)
}
 0x10d   : > { %460 = dma.vmem_to_hbm [thread:$0]  (%p738_p9), %s324_s20, 128, %s812_s29, %s308_s3  }
 0x10e PF: > { %s335_s5 = sand.u32 1, %s645_s9   ;;  %p863_p3 = scmp.ge.s32.totalorder %s665_s14, 2 }
 0x10f   : > { %s336_s16 = scalar_lea.sflag [#allocation4], %s335_s5 }
 0x110   : > { %p470_p13 = pnand %p863_p3, %p745_p11 }
 0x112   : > { %p471_p5 = pneg %p470_p13 }
 0x114   : > { %640 = dma.done.wait (%p471_p5), %s336_s16, 128  }
 0x115   : > { %642 = vsyncadd (%p471_p5), %s336_s16, 4294967168  ;;  %s21_s14 = sadd.s32 1, %s665_s14   ;;  %s864_s9 = smov %s649_s10 }
 0x116   : > { %p18_p12 = scmp.ge.s32.totalorder %s21_s14, 4   ;;  %s865_s10 = smov %s653_s11 }
 0x117   : > { %s866_s11 = smov %s743_s23  ;;  %s867_s12 = smov %s661_s13 }
 0x118   : > { %s868_s13 = smov %s870_s17  ;;  %20 = sbr.rel (!%p18_p12) target bundleno = 8 (0x8), region = 86 }
 0x11d   :  { %341 = vsyncpa [#allocation3], 1 }
 0x11e   :  { %343 = vsyncpa [#allocation3 + $0x1], 1 }
 0x11f   :  { %344 = vsyncpa [#allocation6], 1 }
 0x120   :  { %346 = vsyncpa [#allocation6 + $0x1], 1 }
 0x121   :  { %347 = vsyncpa [#allocation4], 1 }
 0x122   :  { %349 = vsyncpa [#allocation4 + $0x1], 1 }

</bundles_post_ra>
